<compile_context>
chip_gen: v7x
topology: tpu7x:2x2x1
jax: 0.10.0
libtpu: 0.0.40
codegen_flags: <defaults>
</compile_context>

<pallas_src>
import functools
import math

import jax
import jax.numpy as jnp
from jax.experimental import pallas as pl
from jax.experimental.pallas import tpu as pltpu


# -----------------------------------------------------------------------------
# Config / tiling helpers
# -----------------------------------------------------------------------------

_ROW_CAP = 512                     # row-tile cap (multiple of 8)
_COL_CAP = 512                     # output-column tile cap (multiple of 128)
COMPUTE_DTYPE = jnp.bfloat16       # storage dtype for weights/activations


def _vmem_limit_bytes():
    # Generation-aware scoped-VMEM limit with ~25% headroom:
    #   v5e/v6e (128 MiB) -> 96 MiB, v7x (64 MiB) -> 48 MiB.
    try:
        cap = pltpu.get_tpu_info().vmem_capacity_bytes
        return max(32 * 1024 * 1024, min(int(cap * 3 // 4), 96 * 1024 * 1024))
    except Exception:
        return 48 * 1024 * 1024


_VMEM_LIMIT = _vmem_limit_bytes()


def _cp(sem):
    return pltpu.CompilerParams(dimension_semantics=sem,
                                vmem_limit_bytes=_VMEM_LIMIT)


def _row_block(m):
    # whole slab if small (valid block = full dim), else aligned 512-row tiles.
    return m if m <= _ROW_CAP else _ROW_CAP


def _col_block(n):
    return n if n <= _COL_CAP else _COL_CAP


# -----------------------------------------------------------------------------
# Pallas kernels
# -----------------------------------------------------------------------------

def _linear_bias_kernel(x_ref, w_ref, b_ref, o_ref):
    acc = jnp.dot(x_ref[...], w_ref[...], preferred_element_type=jnp.float32)
    o_ref[...] = (acc + b_ref[...].astype(jnp.float32)).astype(o_ref.dtype)


def _linear_nobias_kernel(x_ref, w_ref, o_ref):
    o_ref[...] = jnp.dot(x_ref[...], w_ref[...],
                         preferred_element_type=jnp.float32).astype(o_ref.dtype)


def linear(x, w, b=None, out_dtype=None):
    """x: (M, K) @ w: (K, N) [+ b: (1, N)] -> (M, N). Rows and output cols tiled.

    Bias-free path avoids materializing / DMA-ing a zero bias."""
    M, K = x.shape
    N = w.shape[1]
    out_dtype = out_dtype or x.dtype
    tm, tn = _row_block(M), _col_block(N)
    grid = (pl.cdiv(M, tm), pl.cdiv(N, tn))
    # TODO(synk): tile K as well (reduction axis last + pl.when accumulator) for
    # very large K; K = num_hiddens here, which comfortably fits VMEM.
    x_spec = pl.BlockSpec((tm, K), lambda i, j: (i, 0))
    w_spec = pl.BlockSpec((K, tn), lambda i, j: (0, j))
    o_spec = pl.BlockSpec((tm, tn), lambda i, j: (i, j))
    out_shape = jax.ShapeDtypeStruct((M, N), out_dtype)
    if b is None:
        return pl.pallas_call(
            _linear_nobias_kernel,
            out_shape=out_shape,
            grid=grid,
            in_specs=[x_spec, w_spec],
            out_specs=o_spec,
            compiler_params=_cp(("parallel", "parallel")),
        )(x, w)
    return pl.pallas_call(
        _linear_bias_kernel,
        out_shape=out_shape,
        grid=grid,
        in_specs=[x_spec, w_spec, pl.BlockSpec((1, tn), lambda i, j: (0, j))],
        out_specs=o_spec,
        compiler_params=_cp(("parallel", "parallel")),
    )(x, w, b)


def _qkv_kernel(x_ref, wq_ref, wkv_ref, q_ref, kv_ref):
    x = x_ref[...]
    q_ref[...] = jnp.dot(x, wq_ref[...],
                         preferred_element_type=jnp.float32).astype(q_ref.dtype)
    kv_ref[...] = jnp.dot(x, wkv_ref[...],
                          preferred_element_type=jnp.float32).astype(kv_ref.dtype)


def qkv_project(x, w_q, w_kv):
    """Fused Q/K/V projection when queries == keys == values source.

    x: (M, H).  Emits Q (M, H) and packed [K|V] (M, 2H) as two outputs so the
    wrapper never slices a packed qkv activation (no extra HBM copies)."""
    M, H = x.shape
    tm = _row_block(M)
    grid = (pl.cdiv(M, tm),)
    return pl.pallas_call(
        _qkv_kernel,
        out_shape=(jax.ShapeDtypeStruct((M, H), x.dtype),
                   jax.ShapeDtypeStruct((M, 2 * H), x.dtype)),
        grid=grid,
        in_specs=[
            pl.BlockSpec((tm, H), lambda i: (i, 0)),
            pl.BlockSpec((H, H), lambda i: (0, 0)),
            pl.BlockSpec((H, 2 * H), lambda i: (0, 0)),
        ],
        out_specs=[
            pl.BlockSpec((tm, H), lambda i: (i, 0)),
            pl.BlockSpec((tm, 2 * H), lambda i: (i, 0)),
        ],
        compiler_params=_cp(("parallel",)),
    )(x, w_q, w_kv)


def _proj_addnorm_kernel(y_ref, w_ref, res_ref, g_ref, b_ref, o_ref):
    # LayerNorm(residual + y @ W_o); W_o has no bias (D2L use_bias=False).
    proj = jnp.dot(y_ref[...], w_ref[...], preferred_element_type=jnp.float32)
    s = res_ref[...].astype(jnp.float32) + proj
    mu = jnp.mean(s, axis=-1, keepdims=True)
    var = jnp.mean(jnp.square(s - mu), axis=-1, keepdims=True)
    o_ref[...] = ((s - mu) * jax.lax.rsqrt(var + 1e-5) * g_ref[...]
                  + b_ref[...]).astype(o_ref.dtype)


def proj_add_norm(y, w, res, gamma, beta):
    """Fused: out = LayerNorm(res + y @ w).  y: (M, H), w: (H, H), res: (M, H)."""
    M, Hin = y.shape
    H = w.shape[1]
    tm = _row_block(M)
    grid = (pl.cdiv(M, tm),)
    # TODO(synk): weight/LN-param blocks are grid-invariant -> single-buffer them
    # (pipeline_mode=pl.Buffered(1)) to halve their VMEM footprint on v7x.
    return pl.pallas_call(
        _proj_addnorm_kernel,
        out_shape=jax.ShapeDtypeStruct((M, H), res.dtype),
        grid=grid,
        in_specs=[
            pl.BlockSpec((tm, Hin), lambda i: (i, 0)),
            pl.BlockSpec((Hin, H), lambda i: (0, 0)),
            pl.BlockSpec((tm, H), lambda i: (i, 0)),
            pl.BlockSpec((1, H), lambda i: (0, 0)),
            pl.BlockSpec((1, H), lambda i: (0, 0)),
        ],
        out_specs=pl.BlockSpec((tm, H), lambda i: (i, 0)),
        compiler_params=_cp(("parallel",)),
    )(y, w, res, gamma, beta)


def _ffn_addnorm_kernel(x_ref, w1_ref, b1_ref, w2_ref, b2_ref, g_ref, bn_ref, o_ref):
    x = x_ref[...]
    h = jnp.dot(x, w1_ref[...], preferred_element_type=jnp.float32) + b1_ref[...]
    h = jnp.maximum(h, 0.0)
    y = jnp.dot(h.astype(w2_ref.dtype), w2_ref[...],
                preferred_element_type=jnp.float32) + b2_ref[...]
    s = x.astype(jnp.float32) + y           # residual = FFN input (read once)
    mu = jnp.mean(s, axis=-1, keepdims=True)
    var = jnp.mean(jnp.square(s - mu), axis=-1, keepdims=True)
    o_ref[...] = ((s - mu) * jax.lax.rsqrt(var + 1e-5) * g_ref[...]
                  + bn_ref[...]).astype(o_ref.dtype)


def ffn_add_norm(x, w1, b1, w2, b2, gamma, beta):
    """Fused PositionWiseFFN + AddNorm: LayerNorm(x + relu(x@w1+b1)@w2+b2)."""
    M, H = x.shape
    F = w1.shape[1]
    tm = _row_block(M)
    grid = (pl.cdiv(M, tm),)
    # TODO(synk): for production H/F on v7x (64 MiB VMEM) tile the F reduction
    # axis ('arbitrary', last grid axis + pl.when-initialized VMEM accumulator)
    # instead of holding both FFN weights as fully-resident blocks.
    return pl.pallas_call(
        _ffn_addnorm_kernel,
        out_shape=jax.ShapeDtypeStruct((M, H), x.dtype),
        grid=grid,
        in_specs=[
            pl.BlockSpec((tm, H), lambda i: (i, 0)),
            pl.BlockSpec((H, F), lambda i: (0, 0)),
            pl.BlockSpec((1, F), lambda i: (0, 0)),
            pl.BlockSpec((F, H), lambda i: (0, 0)),
            pl.BlockSpec((1, H), lambda i: (0, 0)),
            pl.BlockSpec((1, H), lambda i: (0, 0)),
            pl.BlockSpec((1, H), lambda i: (0, 0)),
        ],
        out_specs=pl.BlockSpec((tm, H), lambda i: (i, 0)),
        compiler_params=_cp(("parallel",)),
    )(x, w1, b1, w2, b2, gamma, beta)


def _attn_kernel(vl_ref, q_ref, kv_ref, o_ref, *, num_heads, head_dim):
    # One batch element per grid step; ALL heads processed inside the step.
    b = pl.program_id(0)
    vl = vl_ref[b]
    H = num_heads * head_dim
    q = q_ref[0]            # (Tq, H) bf16
    kv = kv_ref[0]          # (Tk, 2H) bf16, packed [K | V]
    k = kv[:, :H]
    v = kv[:, H:]
    scale = 1.0 / math.sqrt(head_dim)
    # Valid-length mask built ONCE (hoisted out of the per-head loop).
    col = jax.lax.broadcasted_iota(jnp.int32, (q.shape[0], k.shape[0]), 1)
    mask = col < vl
    for h in range(num_heads):                      # static unroll over heads
        sl = slice(h * head_dim, (h + 1) * head_dim)
        s = jax.lax.dot_general(
            q[:, sl], k[:, sl], (((1,), (1,)), ((), ())),
            preferred_element_type=jnp.float32) * scale       # (Tq, Tk) fp32
        # D2L masked_softmax: positions >= valid_len get -1e6 before softmax.
        s = jnp.where(mask, s, jnp.float32(-1e6))
        m = jnp.max(s, axis=-1, keepdims=True)
        e = jnp.exp(s - m)
        p = e * pl.reciprocal(jnp.sum(e, axis=-1, keepdims=True), approx=True)
        # Store each head directly into its output slice: retires the head's
        # accumulator immediately instead of keeping all heads live for a concat.
        o_ref[0, :, sl] = jnp.dot(p.astype(v.dtype), v[:, sl],
                                  preferred_element_type=jnp.float32
                                  ).astype(o_ref.dtype)


def sdp_attention(q, kv, valid_lens, num_heads):
    """Multi-head scaled dot-product attention, heads handled in-kernel.

    q: (B, Tq, H), kv: (B, Tk, 2H) packed [K|V], valid_lens: (B,) int32.
    Returns (B, Tq, H) (heads concatenated along H, PyTorch layout).
    """
    B, Tq, H = q.shape
    Tk = kv.shape[1]
    d = H // num_heads
    kernel = functools.partial(_attn_kernel, num_heads=num_heads, head_dim=d)
    # TODO(synk): for long sequences / small B on v7x, add a Tq tile grid axis
    # ('parallel') and an online-softmax loop over Tk blocks ('arbitrary').
    return pl.pallas_call(
        kernel,
        out_shape=jax.ShapeDtypeStruct((B, Tq, H), q.dtype),
        grid_spec=pltpu.PrefetchScalarGridSpec(
            num_scalar_prefetch=1,
            grid=(B,),
            in_specs=[
                pl.BlockSpec((1, Tq, H), lambda b, vl: (b, 0, 0)),
                pl.BlockSpec((1, Tk, 2 * H), lambda b, vl: (b, 0, 0)),
            ],
            out_specs=pl.BlockSpec((1, Tq, H), lambda b, vl: (b, 0, 0)),
        ),
        compiler_params=_cp(("parallel",)),
    )(valid_lens, q, kv)


# -----------------------------------------------------------------------------
# JAX glue (embedding gather, parameter plumbing)
# -----------------------------------------------------------------------------

def positional_encoding(max_len, H):
    pos = jnp.arange(max_len, dtype=jnp.float32).reshape(-1, 1)
    div = jnp.power(10000.0, jnp.arange(0, H, 2, dtype=jnp.float32) / H)
    angles = pos / div
    P = jnp.zeros((1, max_len, H), jnp.float32)
    P = P.at[:, :, 0::2].set(jnp.sin(angles))
    P = P.at[:, :, 1::2].set(jnp.cos(angles))
    return P


def init_params(key, vocab_size, H, ffn_hid, num_layers, max_len=64):
    keys = iter(jax.random.split(key, 4 + 8 * num_layers))

    def w(shape, scale=0.1, dtype=COMPUTE_DTYPE):
        # bf16 storage for MXU weights; biases / LN params stay fp32.
        return (scale * jax.random.normal(next(keys), shape, jnp.float32)).astype(dtype)

    def attn_params():
        # W_q kept separate; W_k|W_v stored pre-concatenated -> packed KV matmul.
        return {"w_q": w((H, H)), "w_kv": w((H, 2 * H)), "w_o": w((H, H))}

    blocks = []
    for _ in range(num_layers):
        blocks.append({
            "attn1": attn_params(),
            "ln1_g": jnp.ones((1, H), jnp.float32), "ln1_b": jnp.zeros((1, H), jnp.float32),
            "attn2": attn_params(),
            "ln2_g": jnp.ones((1, H), jnp.float32), "ln2_b": jnp.zeros((1, H), jnp.float32),
            "ffn_w1": w((H, ffn_hid)), "ffn_b1": jnp.zeros((1, ffn_hid), jnp.float32),
            "ffn_w2": w((ffn_hid, H)), "ffn_b2": jnp.zeros((1, H), jnp.float32),
            "ln3_g": jnp.ones((1, H), jnp.float32), "ln3_b": jnp.zeros((1, H), jnp.float32),
        })
    return {
        "embedding": w((vocab_size, H), scale=1.0),
        "pos_encoding": positional_encoding(max_len, H),
        "blocks": blocks,
        "dense_w": w((H, vocab_size)),
        "dense_b": jnp.zeros((1, vocab_size), jnp.float32),
    }


def transformer_decoder_forward(params, tokens, state, num_heads, num_layers):
    """Mirrors TransformerDecoder.forward in eval mode."""
    enc_outputs, enc_valid_lens = state[0], state[1]
    B, T = tokens.shape
    H = params["embedding"].shape[1]
    Te = enc_outputs.shape[1]
    cdt = COMPUTE_DTYPE

    # Embedding lookup is a gather; kept as JAX glue (scale + posenc in fp32).
    X = jnp.take(params["embedding"], tokens, axis=0).astype(jnp.float32) * math.sqrt(H)
    X = (X + params["pos_encoding"][:, :T, :]).astype(cdt)   # dropout = identity in eval

    enc_flat = enc_outputs.astype(cdt).reshape(-1, H)
    new_kv = list(state[2])
    enc_vl = enc_valid_lens.astype(jnp.int32)          # (B,)

    for i in range(num_layers):
        p = params["blocks"][i]
        # TODO(synk): for autoregressive decoding, cache *projected* K/V per layer in a
        # preallocated max_len buffer updated via input_output_aliases instead of
        # re-projecting the growing raw key_values history every step.
        key_values = X if new_kv[i] is None else jnp.concatenate([new_kv[i], X], axis=1)
        new_kv[i] = key_values
        Tk = key_values.shape[1]
        kv_vl = jnp.full((B,), Tk, dtype=jnp.int32)    # eval: no self-attn mask

        # ---- self-attention -> W_o + AddNorm (fused) ----
        if key_values is X:
            q1f, kv1f = qkv_project(X.reshape(-1, H), p["attn1"]["w_q"], p["attn1"]["w_kv"])
            q1, kv1 = q1f.reshape(B, T, H), kv1f.reshape(B, T, 2 * H)
        else:
            q1 = linear(X.reshape(-1, H), p["attn1"]["w_q"]).reshape(B, T, H)
            kv1 = linear(key_values.reshape(-1, H), p["attn1"]["w_kv"]).reshape(B, Tk, 2 * H)
        a1 = sdp_attention(q1, kv1, kv_vl, num_heads)
        Y = proj_add_norm(a1.reshape(-1, H), p["attn1"]["w_o"], X.reshape(-1, H),
                          p["ln1_g"], p["ln1_b"]).reshape(B, T, H)

        # ---- encoder-decoder attention -> W_o + AddNorm (fused) ----
        q2 = linear(Y.reshape(-1, H), p["attn2"]["w_q"]).reshape(B, T, H)
        # TODO(synk): enc_outputs is constant across decode steps; cache this per-layer
        # K/V projection in `state` so it is computed once per sequence.
        kv2 = linear(enc_flat, p["attn2"]["w_kv"]).reshape(B, Te, 2 * H)
        a2 = sdp_attention(q2, kv2, enc_vl, num_heads)
        Z = proj_add_norm(a2.reshape(-1, H), p["attn2"]["w_o"], Y.reshape(-1, H),
                          p["ln2_g"], p["ln2_b"]).reshape(B, T, H)

        # ---- position-wise FFN + AddNorm (fused) ----
        X = ffn_add_norm(Z.reshape(-1, H), p["ffn_w1"], p["ffn_b1"],
                         p["ffn_w2"], p["ffn_b2"],
                         p["ln3_g"], p["ln3_b"]).reshape(B, T, H)

    # Final vocab projection in fp32 output precision.
    logits = linear(X.reshape(-1, H), params["dense_w"], params["dense_b"],
                    out_dtype=jnp.float32)
    vocab = params["dense_w"].shape[1]
    return logits.reshape(B, T, vocab), [enc_outputs, enc_valid_lens, new_kv]
    # TODO(synk): attention_weights bookkeeping (self._attention_weights) is not
    # exposed; the forward return value (dense(X), state) is fully reproduced.


# -----------------------------------------------------------------------------
# Demo
# -----------------------------------------------------------------------------

if __name__ == "__main__":
    vocab_size = 32
    num_hiddens = 32
    num_heads = 4
    num_layers = 2
    ffn_num_hiddens = 64
    batch, num_steps, enc_steps = 2, 8, 8
    # TODO(synk): for production shapes pad H / head_dim / vocab to multiples of
    # 128 so output stores are lane-dense (biggest single measured lever).

    root = jax.random.PRNGKey(0)
    k_params, k_tok, k_enc = jax.random.split(root, 3)

    params = init_params(k_params, vocab_size, num_hiddens, ffn_num_hiddens, num_layers)
    tokens = jax.random.randint(k_tok, (batch, num_steps), 0, vocab_size)
    enc_outputs = jax.random.normal(k_enc, (batch, enc_steps, num_hiddens), jnp.float32)
    enc_valid_lens = jnp.array([6, 8], dtype=jnp.int32)

    # init_state equivalent
    state = [enc_outputs, enc_valid_lens, [None] * num_layers]

    logits, state = transformer_decoder_forward(params, tokens, state, num_heads, num_layers)
    logits = jax.block_until_ready(logits)
    assert logits.shape == (batch, num_steps, vocab_size)
    assert bool(jnp.all(jnp.isfinite(logits)))
    print("KERNEL_OK")
</pallas_src>

<mosaic_0001>
module attributes {stable_mosaic.version = 11 : i64} {
  func.func @_qkv_kernel(%arg0: i32, %arg1: memref<16x32xbf16, #tpu.memory_space<vmem>>, %arg2: memref<32x32xbf16, #tpu.memory_space<vmem>>, %arg3: memref<32x64xbf16, #tpu.memory_space<vmem>>, %arg4: memref<16x32xbf16, #tpu.memory_space<vmem>>, %arg5: memref<16x64xbf16, #tpu.memory_space<vmem>>) attributes {dimension_semantics = [#tpu.dimension_semantics<parallel>], iteration_bounds = array<i64: 1>, scalar_prefetch = 0 : i64, scratch_operands = 0 : i64, tpu.core_type = #tpu.core_type<tc>, window_params = [{transform_indices = @transform_0, window_bounds = array<i64: 16, 32>}, {pipeline_mode = #tpu.pipeline_mode<synchronous>, transform_indices = @transform_1, window_bounds = array<i64: 32, 32>}, {pipeline_mode = #tpu.pipeline_mode<synchronous>, transform_indices = @transform_2, window_bounds = array<i64: 32, 64>}, {transform_indices = @transform_3, window_bounds = array<i64: 16, 32>}, {transform_indices = @transform_4, window_bounds = array<i64: 16, 64>}]} {
    %c0 = arith.constant 0 : index
    %c0_0 = arith.constant 0 : index
    %0 = vector.load %arg1[%c0, %c0_0] : memref<16x32xbf16, #tpu.memory_space<vmem>>, vector<16x32xbf16>
    %c0_1 = arith.constant 0 : index
    %c0_2 = arith.constant 0 : index
    %1 = vector.load %arg2[%c0_1, %c0_2] : memref<32x32xbf16, #tpu.memory_space<vmem>>, vector<32x32xbf16>
    %cst = arith.constant dense<0.000000e+00> : vector<16x32xf32>
    %2 = tpu.matmul %0, %1, %cst {dimension_numbers = #tpu.dot_dimension_numbers<[1], [0], [0], [1], [0, 0, 1, 1], [], []>} : vector<16x32xbf16>, vector<32x32xbf16>, vector<16x32xf32> -> vector<16x32xf32>
    %3 = arith.truncf %2 : vector<16x32xf32> to vector<16x32xbf16>
    %c0_3 = arith.constant 0 : index
    %c0_4 = arith.constant 0 : index
    %4 = vector.load %arg4[%c0_3, %c0_4] : memref<16x32xbf16, #tpu.memory_space<vmem>>, vector<16x32xbf16>
    tpu.vector_store %arg4[%c0_3, %c0_4], %3 {strides = array<i32>} : memref<16x32xbf16, #tpu.memory_space<vmem>>, vector<16x32xbf16>,
    %c0_5 = arith.constant 0 : index
    %c0_6 = arith.constant 0 : index
    %5 = vector.load %arg3[%c0_5, %c0_6] : memref<32x64xbf16, #tpu.memory_space<vmem>>, vector<32x64xbf16>
    %cst_7 = arith.constant dense<0.000000e+00> : vector<16x64xf32>
    %6 = tpu.matmul %0, %5, %cst_7 {dimension_numbers = #tpu.dot_dimension_numbers<[1], [0], [0], [1], [0, 0, 1, 1], [], []>} : vector<16x32xbf16>, vector<32x64xbf16>, vector<16x64xf32> -> vector<16x64xf32>
    %7 = arith.truncf %6 : vector<16x64xf32> to vector<16x64xbf16>
    %c0_8 = arith.constant 0 : index
    %c0_9 = arith.constant 0 : index
    %8 = vector.load %arg5[%c0_8, %c0_9] : memref<16x64xbf16, #tpu.memory_space<vmem>>, vector<16x64xbf16>
    tpu.vector_store %arg5[%c0_8, %c0_9], %7 {strides = array<i32>} : memref<16x64xbf16, #tpu.memory_space<vmem>>, vector<16x64xbf16>,
    return
  }
  func.func @transform_0(%arg0: i32) -> (i32, i32) {
    %c0_i32 = arith.constant 0 : i32
    %c0_i32_0 = arith.constant 0 : i32
    return %arg0, %c0_i32 : i32, i32
  }
  func.func @transform_1(%arg0: i32) -> (i32, i32) {
    %c0_i32 = arith.constant 0 : i32
    %c0_i32_0 = arith.constant 0 : i32
    %c0_i32_1 = arith.constant 0 : i32
    return %c0_i32, %c0_i32_0 : i32, i32
  }
  func.func @transform_2(%arg0: i32) -> (i32, i32) {
    %c0_i32 = arith.constant 0 : i32
    %c0_i32_0 = arith.constant 0 : i32
    %c0_i32_1 = arith.constant 0 : i32
    return %c0_i32, %c0_i32_0 : i32, i32
  }
  func.func @transform_3(%arg0: i32) -> (i32, i32) {
    %c0_i32 = arith.constant 0 : i32
    %c0_i32_0 = arith.constant 0 : i32
    return %arg0, %c0_i32 : i32, i32
  }
  func.func @transform_4(%arg0: i32) -> (i32, i32) {
    %c0_i32 = arith.constant 0 : i32
    %c0_i32_0 = arith.constant 0 : i32
    return %arg0, %c0_i32 : i32, i32
  }
}

</mosaic_0001>

<bundles_post_ra>
// kernel: tpu_custom_call.1
= control target key start
LH: loop header
LB: loop body
LE: loop exit
PB: predicated region body
PF: predicated region fallthrough
CT: control target
= control target key end

     0   :  { %10 = vsyncpa [#allocation3], 0  ;;  %s537_s0 = inlined_call_operand.hbm [shape: bf16[16,32], index: 0, kind: input, shape index: {}]   ;;  %s538_s1 = inlined_call_operand.hbm [shape: bf16[32,32], index: 1, kind: input, shape index: {}]   ;;  %s539_s2 = inlined_call_operand.hbm [shape: bf16[32,64], index: 2, kind: input, shape index: {}]   ;;  %s540_s3 = inlined_call_operand.hbm [shape: bf16[16,32], index: 3, kind: output, shape index: {0}]   ;;  %s541_s4 = inlined_call_operand.hbm [shape: bf16[16,64], index: 4, kind: output, shape index: {1}]  }
   0x1   :  { %11 = vsyncpa [#allocation6], 0 }
   0x2   :  { %12 = vsyncpa [#allocation4], 0 }
   0x3   :  { %13 = vsyncpa [#allocation10], 0  ;;  %s410_s15 = smov [#allocation5]   ;;  %s411_s17 = smov [#allocation2]  }
   0x4   :  { %s31_s16 = sshll.u32 %s410_s15, 4  ;;  %s19_s18 = sshll.u32 %s411_s17, 4  ;;  %s32_s16 = int_to_ptr.vmem [resolvable:$true] %s31_s16  ;;  %s444_s18 = int_to_ptr.vmem [resolvable:$true] %s19_s18 }
   0x5   :  { %s292_s21 = scalar_lea.hbm %s538_s1, 256 }
   0x6   :  { %p293_p0 = scmp.ne.s32.totalorder %s538_s1, %s292_s21  ;;  %p296_p1 = scmp.lt.u32.totalorder %s292_s21, %s538_s1 }
   0x8   :  { %p298_p2 = pnand %p296_p1, %p293_p0 }
   0xa   :  { %301 = shalt.err (!%p298_p2)
}
   0xb   :  { %s302_s26 = scalar_lea.vmem %s32_s16, 256  ;;  %p307_p4 = scmp.lt.s32.totalorder %s32_s16, %s32_s16 }
   0xc   :  { %p303_p3 = scmp.ne.s32.totalorder %s32_s16, %s302_s26  ;;  %p308_p5 = scmp.lt.s32.totalorder %s302_s26, %s302_s26 }
   0xe   :  { %p309_p6 = por %p308_p5, %p307_p4 }
  0x10   :  { %p310_p7 = pnand %p309_p6, %p303_p3 }
  0x12   :  { %313 = shalt.err (!%p310_p7)
}
  0x13   :  { %s412_s27 = smov 64   ;;  %s413_s28 = smov 4  }
  0x14   :  { %37 = dma.hbm_to_vmem [thread:$0]  %s538_s1, 256, %s32_s16, [#allocation6], %s412_s27, %s412_s27, %s413_s28  }
  0x15   :  { %s314_s7 = scalar_lea.hbm %s537_s0, 128 }
  0x16   :  { %p315_p8 = scmp.ne.s32.totalorder %s537_s0, %s314_s7  ;;  %p318_p9 = scmp.lt.u32.totalorder %s314_s7, %s537_s0 }
  0x18   :  { %p320_p10 = pnand %p318_p9, %p315_p8 }
  0x1a   :  { %323 = shalt.err (!%p320_p10)
}
  0x1b   :  { %s324_s12 = scalar_lea.vmem %s444_s18, 128  ;;  %p329_p12 = scmp.lt.s32.totalorder %s444_s18, %s444_s18 }
  0x1c   :  { %p325_p11 = scmp.ne.s32.totalorder %s444_s18, %s324_s12  ;;  %p330_p13 = scmp.lt.s32.totalorder %s324_s12, %s324_s12 }
  0x1e   :  { %p331_p0 = por %p330_p13, %p329_p12 }
  0x20   :  { %p332_p1 = pnand %p331_p0, %p325_p11 }
  0x22   :  { %335 = shalt.err (!%p332_p1)
}
  0x23   :  { %25 = dma.hbm_to_vmem [thread:$0]  %s537_s0, 128, %s444_s18, [#allocation3], %s412_s27, %s412_s27, %s413_s28  }
  0x24   :  { %s414_s14 = smov [#allocation7]   ;;  %s336_s19 = scalar_lea.hbm %s539_s2, 256 }
  0x25   :  { %s43_s15 = sshll.u32 %s414_s14, 4  ;;  %p337_p2 = scmp.ne.s32.totalorder %s539_s2, %s336_s19  ;;  %s44_s15 = int_to_ptr.vmem [resolvable:$true] %s43_s15 }
  0x26   :  { %p340_p3 = scmp.lt.u32.totalorder %s336_s19, %s539_s2 }
  0x28   :  { %p342_p4 = pnand %p340_p3, %p337_p2 }
  0x2a   :  { %345 = shalt.err (!%p342_p4)
}
  0x2b   :  { %s346_s24 = scalar_lea.vmem %s44_s15, 256  ;;  %p351_p6 = scmp.lt.s32.totalorder %s44_s15, %s44_s15 }
  0x2c   :  { %p347_p5 = scmp.ne.s32.totalorder %s44_s15, %s346_s24  ;;  %p352_p7 = scmp.lt.s32.totalorder %s346_s24, %s346_s24 }
  0x2e   :  { %p353_p8 = por %p352_p7, %p351_p6 }
  0x30   :  { %p354_p9 = pnand %p353_p8, %p347_p5 }
  0x32   :  { %357 = shalt.err (!%p354_p9)
}
  0x33   :  { %49 = dma.hbm_to_vmem [thread:$0]  %s539_s2, 256, %s44_s15, [#allocation6], %s412_s27, %s412_s27, %s413_s28  }
  0x34   :  { %402 = dma.done.wait [#allocation3], 128  }
  0x35   :  { %403 = vsyncadd [#allocation3], 4294967168 }
  0x36   :  { %404 = dma.done.wait [#allocation6], 512  }
  0x37   :  { %405 = vsyncadd [#allocation6], 4294966784  ;;  %v415_v0 = vmov 0.0   ;;  %vm416_vm0 = vmmov 0   ;;  %v287_v1 = vld [vmem:[#allocation5] sm:$0xff]   ;;  %v288_v2 = vld [vmem:[#allocation7] sm:$0xff]  }
  0x38   :  { %262 = vmatprep.subr.bf16.mxu0 %v415_v0  ;;  %270 = vmatprep.subr.bf16.mxu1 %v415_v0  ;;  %v289_v3 = vld [vmem:[#allocation5 + $0x8] sm:$0xff]   ;;  %v290_v4 = vld [vmem:[#allocation7 + $0x8] sm:$0xff]   ;;  %vm83_vm1 = vcmask 261120   ;;  %vm136_vm2 = vcmask 257024   ;;  %s417_s2 = smov [#allocation8]   ;;  %vm204_vm3 = vcmask 519168  }
  0x39   :  { %266 = vmatprep.mubr.msk.bf16.mxu0 %vm416_vm0, %v415_v0  ;;  %274 = vmatprep.mubr.msk.bf16.mxu1 %vm416_vm0, %v415_v0  ;;  %v291_v5 = vld [vmem:[#allocation2] sm:$0xff]   ;;  %s212_s25 = sshll.u32 %s417_s2, 4  ;;  %s418_s26 = smov [#allocation9]   ;;  %s213_s25 = int_to_ptr.vmem [resolvable:$true] %s212_s25 }
  0x3a   :  { %263 = vmatpush3.bf16.msra.mxu0 %v287_v1  ;;  %271 = vmatpush3.bf16.msra.mxu1 %v288_v2  ;;  %s224_s29 = sshll.u32 %s418_s26, 4  ;;  %s358_s30 = scalar_lea.vmem %s213_s25, 128  ;;  %s498_s29 = int_to_ptr.vmem [resolvable:$true] %s224_s29 }
  0x3b   :  { %264 = vmatprep.subr.bf16.mxu0 %v415_v0  ;;  %272 = vmatprep.subr.bf16.mxu1 %v415_v0  ;;  %p359_p10 = scmp.ne.s32.totalorder %s213_s25, %s358_s30  ;;  %p363_p11 = scmp.lt.s32.totalorder %s213_s25, %s213_s25 }
  0x3c   :  { %p364_p12 = scmp.lt.s32.totalorder %s358_s30, %s358_s30 }
  0x3e   :  { %265 = vmatpush3.bf16.msra.mxu0 %v289_v3  ;;  %273 = vmatpush3.bf16.msra.mxu1 %v290_v4  ;;  %p365_p13 = por %p364_p12, %p363_p11 }
  0x40   :  { %p366_p0 = pnand %p365_p13, %p359_p10 }
  0x41   :  { %267 = vmatmul.mubr.msk.bf16.vlgmr.msra.gmra.mrb[0].mxu0 %vm83_vm1, %v291_v5  ;;  %275 = vmatmul.mubr.msk.bf16.vlgmr.msra.gmra.mrb[0].mxu1 %vm83_vm1, %v291_v5 }
 0x114   :  { %v121_v6 = vpop.f32.mrb[0].mxu0  ;;  %v189_v8 = vpop.f32.mrb[0].mxu1 }
 0x115   :  { %v252_v7 = vpack.c.bf16 %v121_v6, %v121_v6  ;;  %v268_v9 = vpop.f32.mrb[1].mxu0  ;;  %v254_v10 = vpack.c.bf16 %v189_v8, %v189_v8  ;;  %v276_v11 = vpop.f32.mrb[1].mxu1 }
 0x116   :  { %v124_v12 = vpop.f32.mrb[2].mxu0  ;;  %v192_v14 = vpop.f32.mrb[2].mxu1 }
 0x117   :  { %v253_v13 = vpack.c.bf16 %v124_v12, %v124_v12  ;;  %v269_v15 = vpop.f32.mrb[3].mxu0  ;;  %137 = vst.msk [vmem:[#allocation8] sm:$0xf] %vm136_vm2, %v252_v7  ;;  %v255_v16 = vpack.c.bf16 %v192_v14, %v192_v14  ;;  %v277_v17 = vpop.f32.mrb[3].mxu1 }
 0x118   :  { %205 = vst.msk [vmem:[#allocation9] sm:$0xf] %vm204_vm3, %v254_v10 }
 0x119   :  { %138 = vst.msk [vmem:[#allocation8 + $0x4] sm:$0xf] %vm136_vm2, %v253_v13 }
 0x11a   :  { %369 = shalt.err (!%p366_p0)
}
 0x11b   :  { %s370_s7 = scalar_lea.hbm %s540_s3, 128 }
 0x11c   :  { %p371_p1 = scmp.ne.s32.totalorder %s540_s3, %s370_s7  ;;  %p374_p2 = scmp.lt.u32.totalorder %s370_s7, %s540_s3 }
 0x11e   :  { %p376_p3 = pnand %p374_p2, %p371_p1 }
 0x120   :  { %379 = shalt.err (!%p376_p3)
}
 0x121   :  { %218 = dma.vmem_to_hbm [thread:$0]  %s213_s25, 128, %s540_s3, [#allocation4], %s412_s27, %s412_s27, %s413_s28   ;;  %206 = vst.msk [vmem:[#allocation9 + $0x4] sm:$0xf] %vm204_vm3, %v255_v16 }
 0x122   :  { %s380_s13 = scalar_lea.vmem %s498_s29, 128  ;;  %p385_p5 = scmp.lt.s32.totalorder %s498_s29, %s498_s29 }
 0x123   :  { %p381_p4 = scmp.ne.s32.totalorder %s498_s29, %s380_s13  ;;  %p386_p6 = scmp.lt.s32.totalorder %s380_s13, %s380_s13 }
 0x125   :  { %p387_p7 = por %p386_p6, %p385_p5 }
 0x127   :  { %p388_p8 = pnand %p387_p7, %p381_p4 }
 0x129   :  { %391 = shalt.err (!%p388_p8)
}
 0x12a   :  { %s392_s16 = scalar_lea.hbm %s541_s4, 128 }
 0x12b   :  { %p393_p9 = scmp.ne.s32.totalorder %s541_s4, %s392_s16  ;;  %p396_p10 = scmp.lt.u32.totalorder %s392_s16, %s541_s4 }
 0x12d   :  { %p398_p11 = pnand %p396_p10, %p393_p9 }
 0x12f   :  { %401 = shalt.err (!%p398_p11)
}
 0x130   :  { %230 = dma.vmem_to_hbm [thread:$0]  %s498_s29, 128, %s541_s4, [#allocation10], %s412_s27, %s412_s27, %s413_s28  }
 0x131   :  { %406 = dma.done.wait [#allocation4], 128  }
 0x132   :  { %407 = vsyncadd [#allocation4], 4294967168 }
 0x133   :  { %408 = dma.done.wait [#allocation10], 128  }
 0x134   :  { %409 = vsyncadd [#allocation10], 4294967168 }
 0x135   :  { %237 = vsyncpa [#allocation3], 1 }
 0x136   :  { %238 = vsyncpa [#allocation6], 1 }
 0x137   :  { %239 = vsyncpa [#allocation4], 1 }
 0x138   :  { %240 = vsyncpa [#allocation10], 1 }

</bundles_post_ra>
